<compile_context>
chip_gen: v6e
topology: v6e:2x2x1
jax: 0.10.0
libtpu: 0.0.40
codegen_flags: <defaults>
</compile_context>

<pallas_src>
import jax
import jax.numpy as jnp
from jax.experimental import pallas as pl
from jax.experimental.pallas import tpu as pltpu


def _conv_bn_silu_kernel(x_ref, w_ref, s_ref, b_ref, o_ref, acc_ref):
    # x_ref:  (TN, H, W*C1)        bf16  -- one batch tile, lane-dense
    # w_ref:  (K, W*C1, W*C2)      bf16  -- kx taps + W zero-pad folded in
    # s_ref:  (1, W*C2)            f32   -- BN scale tiled along W (lane-dense)
    # b_ref:  (1, W*C2)            f32   -- BN bias tiled along W
    # o_ref:  (TN, H, W*C2)        bf16  -- lane-dense output tile
    # acc_ref:(TN, H + 2P, W*C2)   f32   -- VMEM scratch accumulator
    TN, H, WC1 = x_ref.shape
    K = w_ref.shape[0]
    WC2 = w_ref.shape[2]
    P = K // 2

    acc_ref[...] = jnp.zeros_like(acc_ref)

    # LHS loaded once, already bf16; the reshape only merges leading dims (layout no-op).
    lhs = x_ref[...].reshape(TN * H, WC1)

    # K accumulated MXU pushes against the SAME lhs.  The kx shifts / W padding live
    # in w_ref; the ky shift + H padding are realised by accumulating each tap's
    # result at a static row offset: input row j via tap ky contributes to output
    # row j - (ky - P), i.e. accumulator row j + (2P - ky).  Rows [0, P) and
    # [H+P, H+2P) hold the would-be out-of-bounds contributions and are discarded.
    for ky in range(K):
        pk = jnp.dot(lhs, w_ref[ky], preferred_element_type=jnp.float32)
        off = 2 * P - ky                                    # static, in [0, 2P]
        acc_ref[:, off:off + H, :] += pk.reshape(TN, H, WC2)

    # Folded BatchNorm + SiLU in f32 (v5e has no bf16 VALU/EUP), bf16 lane-dense store.
    y = acc_ref[:, P:P + H, :].reshape(TN * H, WC2)
    y = y * s_ref[...] + b_ref[...]
    y = y * jax.nn.sigmoid(y)                               # SiLU
    o_ref[...] = y.reshape(TN, H, WC2).astype(o_ref.dtype)  # unmasked 128-lane store


def _build_block_weight(w_oihw, W):
    """Wb[ky, wi*C1+ci, wo*C2+co] = w[co, ci, ky, wi-wo+P] (0 outside the k x k
    support; restricting wi to [0, W) also realises the W zero-padding).
    Built with jnp ops only -> traceable / jittable."""
    C2, C1, K, _ = w_oihw.shape
    P = K // 2
    kx = jnp.arange(K)
    wi = jnp.arange(W)
    wo = jnp.arange(W)
    # shift[kx, wi, wo] = 1  iff  wi == wo + kx - P
    shift = (wi[None, :, None] == wo[None, None, :] + (kx[:, None, None] - P))
    shift = shift.astype(jnp.float32)
    wt = jnp.transpose(w_oihw.astype(jnp.float32), (2, 3, 1, 0))    # (Ky, Kx, C1, C2)
    Wb = jnp.einsum("xio,yxcd->yicod", shift, wt)                    # (K, W, C1, W, C2)
    return Wb.reshape(K, W * C1, W * C2).astype(jnp.bfloat16)


def _pick_batch_tile(N, H, W, C1, C2, P, target_rows=256, vmem_budget=12 * 2**20):
    """Largest batch tile TN dividing N with TN*H >= target_rows when possible,
    kept under a conservative per-block VMEM budget (sized so double-buffered
    blocks + scratch also fit v7x's 64 MiB VMEM with ample headroom)."""
    per_img = (2 * H * W * C1 * 2          # bf16 input block, double-buffered
               + 2 * H * W * C2 * 2        # bf16 output block, double-buffered
               + (H + 2 * P) * W * C2 * 4)  # f32 accumulator scratch
    cap = max(1, vmem_budget // max(per_img, 1))
    tn = min(N, max(1, -(-target_rows // H)), cap)
    while N % tn:
        tn -= 1
    return tn


def conv_bn_silu_pallas(x_nhwc, w_oihw, bn_scale, bn_bias):
    """Fused Conv2d(k, s=1, p=k//2, g=1, bias=False) + BatchNorm2d(eval) + SiLU.

    x_nhwc:  (N, H, W, C1) channels-last activations (bf16 recommended; this is the
             persistent inter-layer layout -- no transposes, no padding pass).
    w_oihw:  (C2, C1, k, k) PyTorch-layout conv weight.
    bn_*:    (C2,) folded eval-mode BatchNorm scale / bias.
    Returns (N, H, W, C2) bf16, channels-last.
    """
    N, H, W, C1 = x_nhwc.shape
    C2, C1w, KH, KW = w_oihw.shape
    assert C1w == C1 and KH == KW and KH % 2 == 1, "odd k, groups=1, dilation=1 only"
    K, P = KH, KH // 2

    x = x_nhwc.astype(jnp.bfloat16).reshape(N, H, W * C1)    # merges trailing dims: free
    Wb = _build_block_weight(w_oihw, W)                      # bf16 MXU operand
    s_t = jnp.tile(bn_scale.astype(jnp.float32), W).reshape(1, W * C2)
    b_t = jnp.tile(bn_bias.astype(jnp.float32), W).reshape(1, W * C2)

    TN = _pick_batch_tile(N, H, W, C1, C2, P)
    grid = (N // TN,)
    # NOTE(v7x): with 2 TensorCores keep the grid a multiple of 2 once N*H is large
    # enough that halving TN still leaves >=128 rows per dot; at this demo size one
    # big step (all 32 rows in a single set of MXU pushes) is the right call on any
    # generation.

    out = pl.pallas_call(
        _conv_bn_silu_kernel,
        out_shape=jax.ShapeDtypeStruct((N, H, W * C2), jnp.bfloat16),
        grid_spec=pltpu.PrefetchScalarGridSpec(
            num_scalar_prefetch=0,
            grid=grid,
            in_specs=[
                pl.BlockSpec((TN, H, W * C1), lambda i: (i, 0, 0)),
                # Constant index_maps: weights / BN vectors DMA'd once, stay resident.
                pl.BlockSpec((K, W * C1, W * C2), lambda i: (0, 0, 0)),
                pl.BlockSpec((1, W * C2), lambda i: (0, 0)),
                pl.BlockSpec((1, W * C2), lambda i: (0, 0)),
            ],
            out_specs=pl.BlockSpec((TN, H, W * C2), lambda i: (i, 0, 0)),
            scratch_shapes=[pltpu.VMEM((TN, H + 2 * P, W * C2), jnp.float32)],
        ),
        compiler_params=pltpu.CompilerParams(
            dimension_semantics=("parallel",),      # batch tiles across TCs on v7x
            # 32 MiB is safe on every generation (v7x physical VMEM is 64 MiB);
            # raise toward 64-100 MiB on v5e/v6e (128 MiB parts) if TN is grown.
            vmem_limit_bytes=32 * 1024 * 1024),
    )(x, Wb, s_t, b_t)

    return out.reshape(N, H, W, C2)                          # split of last dim: free


# ---------------- pure-JAX NHWC reference (PyTorch eval semantics, f32 math) ----
def _fold_bn(gamma, beta, mean, var, eps=1e-5):
    scale = gamma / jnp.sqrt(var + eps)
    return scale, beta - mean * scale


def conv_bn_silu_ref(x_nhwc, w_oihw, scale, bias):
    p = w_oihw.shape[2] // 2
    w_hwio = jnp.transpose(w_oihw.astype(jnp.float32), (2, 3, 1, 0))
    y = jax.lax.conv_general_dilated(
        x_nhwc.astype(jnp.float32), w_hwio, window_strides=(1, 1),
        padding=[(p, p), (p, p)], dimension_numbers=("NHWC", "HWIO", "NHWC"))
    y = y * scale[None, None, None, :] + bias[None, None, None, :]
    return y * jax.nn.sigmoid(y)


if __name__ == "__main__":
    key = jax.random.PRNGKey(0)
    N, H, W, C1, C2 = 2, 16, 16, 4, 8        # Conv(c1=4, c2=8, k) on a batch of 2, 16x16

    for k in (3, 1):                         # k = 3 and k = 1 (autopad 1 / 0)
        ks = jax.random.split(jax.random.fold_in(key, k), 6)
        # Activations live in the persistent NHWC / bf16 inter-layer layout.
        x = jax.random.normal(ks[0], (N, H, W, C1), jnp.float32).astype(jnp.bfloat16)
        wt = jax.random.normal(ks[1], (C2, C1, k, k), jnp.float32) * 0.3
        gamma = 1.0 + 0.1 * jax.random.normal(ks[2], (C2,), jnp.float32)
        beta = 0.1 * jax.random.normal(ks[3], (C2,), jnp.float32)
        mean = 0.1 * jax.random.normal(ks[4], (C2,), jnp.float32)
        var = jnp.abs(jax.random.normal(ks[5], (C2,), jnp.float32)) + 0.5
        scale, bias = _fold_bn(gamma, beta, mean, var)

        out = jax.block_until_ready(conv_bn_silu_pallas(x, wt, scale, bias))
        ref = jax.block_until_ready(conv_bn_silu_ref(x, wt, scale, bias))

        assert out.shape == ref.shape == (N, H, W, C2)
        out_f32 = out.astype(jnp.float32)
        max_err = float(jnp.max(jnp.abs(out_f32 - ref)))
        # bf16 MXU operands + bf16 output store vs f32 reference -> small rounding.
        assert jnp.allclose(out_f32, ref, atol=5e-2, rtol=5e-2), (k, max_err)

    print("KERNEL_OK")
</pallas_src>

<mosaic_0001>
module attributes {stable_mosaic.version = 11 : i64} {
  func.func @_conv_bn_silu_kernel(%arg0: i32, %arg1: memref<2x16x64xbf16, #tpu.memory_space<vmem>>, %arg2: memref<3x64x128xbf16, #tpu.memory_space<vmem>>, %arg3: memref<1x128xf32, #tpu.memory_space<vmem>>, %arg4: memref<1x128xf32, #tpu.memory_space<vmem>>, %arg5: memref<2x16x128xbf16, #tpu.memory_space<vmem>>, %arg6: memref<2x18x128xf32, #tpu.memory_space<vmem>>) attributes {dimension_semantics = [#tpu.dimension_semantics<parallel>], iteration_bounds = array<i64: 1>, scalar_prefetch = 0 : i64, scratch_operands = 1 : i64, tpu.core_type = #tpu.core_type<tc>, window_params = [{transform_indices = @transform_0, window_bounds = array<i64: 2, 16, 64>}, {pipeline_mode = #tpu.pipeline_mode<synchronous>, transform_indices = @transform_1, window_bounds = array<i64: 3, 64, 128>}, {pipeline_mode = #tpu.pipeline_mode<synchronous>, transform_indices = @transform_2, window_bounds = array<i64: 1, 128>}, {pipeline_mode = #tpu.pipeline_mode<synchronous>, transform_indices = @transform_3, window_bounds = array<i64: 1, 128>}, {transform_indices = @transform_4, window_bounds = array<i64: 2, 16, 128>}]} {
    %cst = arith.constant 0.000000e+00 : f32
    %0 = vector.broadcast %cst : f32 to vector<2x18x128xf32>
    %c0 = arith.constant 0 : index
    %c0_0 = arith.constant 0 : index
    %c0_1 = arith.constant 0 : index
    %1 = vector.load %arg6[%c0, %c0_0, %c0_1] : memref<2x18x128xf32, #tpu.memory_space<vmem>>, vector<2x18x128xf32>
    tpu.vector_store %arg6[%c0, %c0_0, %c0_1], %0 {strides = array<i32>} : memref<2x18x128xf32, #tpu.memory_space<vmem>>, vector<2x18x128xf32>,
    %c0_2 = arith.constant 0 : index
    %c0_3 = arith.constant 0 : index
    %c0_4 = arith.constant 0 : index
    %2 = vector.load %arg1[%c0_2, %c0_3, %c0_4] : memref<2x16x64xbf16, #tpu.memory_space<vmem>>, vector<2x16x64xbf16>
    %3 = vector.shape_cast %2 : vector<2x16x64xbf16> to vector<32x64xbf16>
    %c0_5 = arith.constant 0 : index
    %c0_6 = arith.constant 0 : index
    %c0_7 = arith.constant 0 : index
    %4 = vector.load %arg2[%c0_5, %c0_6, %c0_7] : memref<3x64x128xbf16, #tpu.memory_space<vmem>>, vector<1x64x128xbf16>
    %5 = vector.shape_cast %4 : vector<1x64x128xbf16> to vector<64x128xbf16>
    %cst_8 = arith.constant dense<0.000000e+00> : vector<32x128xf32>
    %6 = tpu.matmul %3, %5, %cst_8 {dimension_numbers = #tpu.dot_dimension_numbers<[1], [0], [0], [1], [0, 0, 1, 1], [], []>} : vector<32x64xbf16>, vector<64x128xbf16>, vector<32x128xf32> -> vector<32x128xf32>
    %c0_9 = arith.constant 0 : index
    %c2 = arith.constant 2 : index
    %c0_10 = arith.constant 0 : index
    %7 = vector.load %arg6[%c0_9, %c2, %c0_10] : memref<2x18x128xf32, #tpu.memory_space<vmem>>, vector<2x16x128xf32>
    %8 = vector.shape_cast %6 : vector<32x128xf32> to vector<2x16x128xf32>
    %9 = arith.addf %7, %8 : vector<2x16x128xf32>
    %c0_11 = arith.constant 0 : index
    %c2_12 = arith.constant 2 : index
    %c0_13 = arith.constant 0 : index
    %10 = vector.load %arg6[%c0_11, %c2_12, %c0_13] : memref<2x18x128xf32, #tpu.memory_space<vmem>>, vector<2x16x128xf32>
    tpu.vector_store %arg6[%c0_11, %c2_12, %c0_13], %9 {strides = array<i32>} : memref<2x18x128xf32, #tpu.memory_space<vmem>>, vector<2x16x128xf32>,
    %c1 = arith.constant 1 : index
    %c0_14 = arith.constant 0 : index
    %c0_15 = arith.constant 0 : index
    %11 = vector.load %arg2[%c1, %c0_14, %c0_15] : memref<3x64x128xbf16, #tpu.memory_space<vmem>>, vector<1x64x128xbf16>
    %12 = vector.shape_cast %11 : vector<1x64x128xbf16> to vector<64x128xbf16>
    %cst_16 = arith.constant dense<0.000000e+00> : vector<32x128xf32>
    %13 = tpu.matmul %3, %12, %cst_16 {dimension_numbers = #tpu.dot_dimension_numbers<[1], [0], [0], [1], [0, 0, 1, 1], [], []>} : vector<32x64xbf16>, vector<64x128xbf16>, vector<32x128xf32> -> vector<32x128xf32>
    %c0_17 = arith.constant 0 : index
    %c1_18 = arith.constant 1 : index
    %c0_19 = arith.constant 0 : index
    %14 = vector.load %arg6[%c0_17, %c1_18, %c0_19] : memref<2x18x128xf32, #tpu.memory_space<vmem>>, vector<2x16x128xf32>
    %15 = vector.shape_cast %13 : vector<32x128xf32> to vector<2x16x128xf32>
    %16 = arith.addf %14, %15 : vector<2x16x128xf32>
    %c0_20 = arith.constant 0 : index
    %c1_21 = arith.constant 1 : index
    %c0_22 = arith.constant 0 : index
    %17 = vector.load %arg6[%c0_20, %c1_21, %c0_22] : memref<2x18x128xf32, #tpu.memory_space<vmem>>, vector<2x16x128xf32>
    tpu.vector_store %arg6[%c0_20, %c1_21, %c0_22], %16 {strides = array<i32>} : memref<2x18x128xf32, #tpu.memory_space<vmem>>, vector<2x16x128xf32>,
    %c2_23 = arith.constant 2 : index
    %c0_24 = arith.constant 0 : index
    %c0_25 = arith.constant 0 : index
    %18 = vector.load %arg2[%c2_23, %c0_24, %c0_25] : memref<3x64x128xbf16, #tpu.memory_space<vmem>>, vector<1x64x128xbf16>
    %19 = vector.shape_cast %18 : vector<1x64x128xbf16> to vector<64x128xbf16>
    %cst_26 = arith.constant dense<0.000000e+00> : vector<32x128xf32>
    %20 = tpu.matmul %3, %19, %cst_26 {dimension_numbers = #tpu.dot_dimension_numbers<[1], [0], [0], [1], [0, 0, 1, 1], [], []>} : vector<32x64xbf16>, vector<64x128xbf16>, vector<32x128xf32> -> vector<32x128xf32>
    %c0_27 = arith.constant 0 : index
    %c0_28 = arith.constant 0 : index
    %c0_29 = arith.constant 0 : index
    %21 = vector.load %arg6[%c0_27, %c0_28, %c0_29] : memref<2x18x128xf32, #tpu.memory_space<vmem>>, vector<2x16x128xf32>
    %22 = vector.shape_cast %20 : vector<32x128xf32> to vector<2x16x128xf32>
    %23 = arith.addf %21, %22 : vector<2x16x128xf32>
    %c0_30 = arith.constant 0 : index
    %c0_31 = arith.constant 0 : index
    %c0_32 = arith.constant 0 : index
    %24 = vector.load %arg6[%c0_30, %c0_31, %c0_32] : memref<2x18x128xf32, #tpu.memory_space<vmem>>, vector<2x16x128xf32>
    tpu.vector_store %arg6[%c0_30, %c0_31, %c0_32], %23 {strides = array<i32>} : memref<2x18x128xf32, #tpu.memory_space<vmem>>, vector<2x16x128xf32>,
    %c0_33 = arith.constant 0 : index
    %c1_34 = arith.constant 1 : index
    %c0_35 = arith.constant 0 : index
    %25 = vector.load %arg6[%c0_33, %c1_34, %c0_35] : memref<2x18x128xf32, #tpu.memory_space<vmem>>, vector<2x16x128xf32>
    %26 = vector.shape_cast %25 : vector<2x16x128xf32> to vector<32x128xf32>
    %c0_36 = arith.constant 0 : index
    %c0_37 = arith.constant 0 : index
    %27 = vector.load %arg3[%c0_36, %c0_37] : memref<1x128xf32, #tpu.memory_space<vmem>>, vector<1x128xf32>
    %28 = vector.broadcast %27 : vector<1x128xf32> to vector<32x128xf32>
    %29 = arith.mulf %26, %28 : vector<32x128xf32>
    %c0_38 = arith.constant 0 : index
    %c0_39 = arith.constant 0 : index
    %30 = vector.load %arg4[%c0_38, %c0_39] : memref<1x128xf32, #tpu.memory_space<vmem>>, vector<1x128xf32>
    %31 = vector.broadcast %30 : vector<1x128xf32> to vector<32x128xf32>
    %32 = arith.addf %29, %31 : vector<32x128xf32>
    %33 = arith.negf %32 : vector<32x128xf32>
    %34 = math.exp %33 : vector<32x128xf32>
    %cst_40 = arith.constant 1.000000e+00 : f32
    %35 = vector.broadcast %cst_40 : f32 to vector<32x128xf32>
    %36 = arith.addf %35, %34 : vector<32x128xf32>
    %37 = arith.divf %35, %36 : vector<32x128xf32>
    %38 = arith.mulf %32, %37 : vector<32x128xf32>
    %39 = vector.shape_cast %38 : vector<32x128xf32> to vector<2x16x128xf32>
    %40 = arith.truncf %39 : vector<2x16x128xf32> to vector<2x16x128xbf16>
    %c0_41 = arith.constant 0 : index
    %c0_42 = arith.constant 0 : index
    %c0_43 = arith.constant 0 : index
    %41 = vector.load %arg5[%c0_41, %c0_42, %c0_43] : memref<2x16x128xbf16, #tpu.memory_space<vmem>>, vector<2x16x128xbf16>
    tpu.vector_store %arg5[%c0_41, %c0_42, %c0_43], %40 {strides = array<i32>} : memref<2x16x128xbf16, #tpu.memory_space<vmem>>, vector<2x16x128xbf16>,
    return
  }
  func.func @transform_0(%arg0: i32) -> (i32, i32, i32) {
    %c0_i32 = arith.constant 0 : i32
    %c0_i32_0 = arith.constant 0 : i32
    %c0_i32_1 = arith.constant 0 : i32
    return %arg0, %c0_i32, %c0_i32_0 : i32, i32, i32
  }
  func.func @transform_1(%arg0: i32) -> (i32, i32, i32) {
    %c0_i32 = arith.constant 0 : i32
    %c0_i32_0 = arith.constant 0 : i32
    %c0_i32_1 = arith.constant 0 : i32
    %c0_i32_2 = arith.constant 0 : i32
    return %c0_i32, %c0_i32_0, %c0_i32_1 : i32, i32, i32
  }
  func.func @transform_2(%arg0: i32) -> (i32, i32) {
    %c0_i32 = arith.constant 0 : i32
    %c0_i32_0 = arith.constant 0 : i32
    %c0_i32_1 = arith.constant 0 : i32
    return %c0_i32, %c0_i32_0 : i32, i32
  }
  func.func @transform_3(%arg0: i32) -> (i32, i32) {
    %c0_i32 = arith.constant 0 : i32
    %c0_i32_0 = arith.constant 0 : i32
    %c0_i32_1 = arith.constant 0 : i32
    return %c0_i32, %c0_i32_0 : i32, i32
  }
  func.func @transform_4(%arg0: i32) -> (i32, i32, i32) {
    %c0_i32 = arith.constant 0 : i32
    %c0_i32_0 = arith.constant 0 : i32
    %c0_i32_1 = arith.constant 0 : i32
    return %arg0, %c0_i32, %c0_i32_0 : i32, i32, i32
  }
}

</mosaic_0001>

<bundles_post_ra>
// kernel: tpu_custom_call.1
= control target key start
LH: loop header
LB: loop body
LE: loop exit
PB: predicated region body
PF: predicated region fallthrough
CT: control target
= control target key end

     0   :  { %9 = vsyncpa [#allocation4], 0  ;;  %s709_s0 = inlined_call_operand.hbm [shape: bf16[2,16,64], index: 0, kind: input, shape index: {}]   ;;  %s710_s1 = inlined_call_operand.hbm [shape: bf16[3,64,128], index: 1, kind: input, shape index: {}]   ;;  %s711_s2 = inlined_call_operand.vmem [shape: f32[1,128], index: 2, kind: input, shape index: {}]   ;;  %s712_s3 = inlined_call_operand.vmem [shape: f32[1,128], index: 3, kind: input, shape index: {}]   ;;  %s713_s4 = inlined_call_operand.hbm [shape: bf16[2,16,128], index: 4, kind: output, shape index: {}]  }
   0x1   :  { %10 = vsyncpa [#allocation7], 0 }
   0x2   :  { %11 = vsyncpa [#allocation5], 0  ;;  %s648_s15 = smov [#allocation3]  }
   0x3   :  { %s17_s16 = sshll.u32 %s648_s15, 4  ;;  %s18_s16 = int_to_ptr.vmem [resolvable:$true] %s17_s16 }
   0x4   :  { %s590_s17 = scalar_lea.vmem %s18_s16, 256  ;;  %p595_p1 = scmp.lt.s32.totalorder %s18_s16, %s18_s16 }
   0x5   :  { %p591_p0 = scmp.ne.s32.totalorder %s18_s16, %s590_s17  ;;  %p596_p2 = scmp.lt.s32.totalorder %s590_s17, %s590_s17 }
   0x7   :  { %p597_p3 = por %p596_p2, %p595_p1 }
   0x9   :  { %p598_p4 = pnand %p597_p3, %p591_p0 }
   0xb   :  { %601 = shalt.err (!%p598_p4)
}
   0xc   :  { %s649_s18 = smov 64   ;;  %s650_s19 = smov 4  }
   0xd   :  { %23 = dma.hbm_to_vmem [thread:$0]  %s709_s0, 256, %s18_s16, [#allocation4], %s649_s18, %s649_s18, %s650_s19  }
   0xe   :  { %s651_s22 = smov [#allocation6]  }
   0xf   :  { %s29_s23 = sshll.u32 %s651_s22, 4  ;;  %s30_s23 = int_to_ptr.vmem [resolvable:$true] %s29_s23 }
  0x10   :  { %s610_s24 = scalar_lea.vmem %s30_s23, 1536  ;;  %p615_p6 = scmp.lt.s32.totalorder %s30_s23, %s30_s23 }
  0x11   :  { %p611_p5 = scmp.ne.s32.totalorder %s30_s23, %s610_s24  ;;  %p616_p7 = scmp.lt.s32.totalorder %s610_s24, %s610_s24 }
  0x13   :  { %p617_p8 = por %p616_p7, %p615_p6 }
  0x15   :  { %p618_p9 = pnand %p617_p8, %p611_p5 }
  0x17   :  { %621 = shalt.err (!%p618_p9)
}
  0x18   :  { %35 = dma.hbm_to_vmem [thread:$0]  %s710_s1, 1536, %s30_s23, [#allocation7], %s649_s18, %s649_s18, %s650_s19  }
  0x19   :  { %642 = dma.done.wait [#allocation4], 256  }
  0x1a   :  { %643 = vsyncadd [#allocation4], 4294967040 }
  0x1b   :  { %644 = dma.done.wait [#allocation7], 1536  }
  0x1c   :  { %645 = vsyncadd [#allocation7], 4294965760  ;;  %v652_v0 = vmov 0.0   ;;  %v552_v1 = vld [vmem:[#allocation6 + $0x18] sm:$0xff]   ;;  %v553_v2 = vld [vmem:[#allocation6 + $0x10] sm:$0xff]   ;;  %vm99_vm0 = vcmask 523264  }
  0x1d   :  { %50 = vst [vmem:[#allocation2 + $0x18] sm:$0xff] %v652_v0  ;;  %51 = vst [vmem:[#allocation2 + $0x20] sm:$0xff] %v652_v0  ;;  %510 = vmatprep.subr.bf16.mxu0 %v552_v1  ;;  %v554_v3 = vld [vmem:[#allocation6 + $0x38] sm:$0xff]   ;;  %v555_v4 = vld [vmem:[#allocation6 + $0x8] sm:$0xff]  }
  0x1e   :  { %47 = vst [vmem:[#allocation2] sm:$0xff] %v652_v0  ;;  %48 = vst [vmem:[#allocation2 + $0x8] sm:$0xff] %v652_v0  ;;  %511 = vmatpush3.bf16.msra.mxu0 %v552_v1  ;;  %522 = vmatprep.subr.bf16.mxu1 %v554_v3  ;;  %v556_v5 = vld [vmem:[#allocation6 + $0x30] sm:$0xff]   ;;  %v558_v6 = vld [vmem:[#allocation6 + $0x28] sm:$0xff]  }
  0x1f   :  { %49 = vst [vmem:[#allocation2 + $0x10] sm:$0x3] %v652_v0  ;;  %52 = vst [vmem:[#allocation2 + $0x28] sm:$0x3] %v652_v0  ;;  %512 = vmatprep.subr.bf16.mxu0 %v553_v2  ;;  %523 = vmatpush3.bf16.msra.mxu1 %v554_v3  ;;  %v559_v7 = vld [vmem:[#allocation3] sm:$0xff]   ;;  %v557_v8 = vld [vmem:[#allocation6] sm:$0xff]  }
  0x20   :  { %524 = vmatprep.subr.bf16.mxu1 %v556_v5  ;;  %518 = vmatprep.mubr.msk.bf16.mxu0 %vm99_vm0, %v559_v7  ;;  %v561_v9 = vld [vmem:[#allocation6 + $0x20] sm:$0xff]   ;;  %v562_v10 = vld [vmem:[#allocation6 + $0x58] sm:$0xff]   ;;  %v563_v12 = vld [vmem:[#allocation6 + $0x50] sm:$0xff]  }
  0x21   :  { %530 = vmatprep.mubr.msk.bf16.mxu1 %vm99_vm0, %v559_v7  ;;  %v560_v11 = vld [vmem:[#allocation3 + $0x8] sm:$0xff]   ;;  %v564_v13 = vld [vmem:[#allocation6 + $0x48] sm:$0xff]   ;;  %v565_v14 = vld [vmem:[#allocation6 + $0x40] sm:$0xff]  }
  0x22   :  { %513 = vmatpush3.bf16.msra.mxu0 %v553_v2  ;;  %v467_v51 = vld [vmem:[%s711_s2] ss:$0 sm:$0xff]  ;;  %s653_s2 = smov [#allocation8]  }
  0x23   :  { %514 = vmatprep.subr.bf16.mxu0 %v555_v4  ;;  %525 = vmatpush3.bf16.msra.mxu1 %v556_v5  ;;  %v468_v54 = vld [vmem:[%s712_s3] ss:$0 sm:$0xff]  ;;  %s434_s3 = sshll.u32 %s653_s2, 4  ;;  %s435_s3 = int_to_ptr.vmem [resolvable:$true] %s434_s3 }
  0x24   :  { %526 = vmatprep.subr.bf16.mxu1 %v558_v6  ;;  %v157_v15 = vld [vmem:[#allocation2 + $0x1a] sm:$0xff]  ;;  %s622_s29 = scalar_lea.vmem %s435_s3, 256  ;;  %p627_p11 = scmp.lt.s32.totalorder %s435_s3, %s435_s3 }
  0x25   :  { %v155_v17 = vld [vmem:[#allocation2 + $0x2] sm:$0xff]  ;;  %p623_p10 = scmp.ne.s32.totalorder %s435_s3, %s622_s29  ;;  %p628_p12 = scmp.lt.s32.totalorder %s622_s29, %s622_s29 }
  0x26   :  { %515 = vmatpush3.bf16.msra.mxu0 %v555_v4  ;;  %v158_v20 = vld [vmem:[#allocation2 + $0x22] sm:$0xff]  ;;  %v156_v24 = vld [vmem:[#allocation2 + $0xa] sm:$0xff] }
  0x27   :  { %516 = vmatprep.subr.bf16.mxu0 %v557_v8  ;;  %527 = vmatpush3.bf16.msra.mxu1 %v558_v6  ;;  %p629_p13 = por %p628_p12, %p627_p11 }
  0x28   :  { %528 = vmatprep.subr.bf16.mxu1 %v561_v9 }
  0x29   :  { %p630_p0 = pnand %p629_p13, %p623_p10 }
  0x2a   :  { %517 = vmatpush3.bf16.msra.mxu0 %v557_v8 }
  0x2b   :  { %534 = vmatprep.subr.bf16.mxu0 %v562_v10  ;;  %529 = vmatpush3.bf16.msra.mxu1 %v561_v9 }
  0x2d   :  { %519 = vmatmul.mubr.msk.bf16.vlgmr.msra.gmra.mxu0 %vm99_vm0, %v560_v11 }
  0x2e   :  { %535 = vmatpush3.bf16.msra.mxu0 %v562_v10  ;;  %542 = vmatprep.mubr.msk.bf16.mxu0 %vm99_vm0, %v559_v7 }
  0x2f   :  { %531 = vmatmul.mubr.msk.bf16.vlgmr.msra.gmra.mxu1 %vm99_vm0, %v560_v11  ;;  %536 = vmatprep.subr.bf16.mxu0 %v563_v12 }
  0x32   :  { %537 = vmatpush3.bf16.msra.mxu0 %v563_v12 }
  0x33   :  { %538 = vmatprep.subr.bf16.mxu0 %v564_v13 }
  0x36   :  { %539 = vmatpush3.bf16.msra.mxu0 %v564_v13 }
  0x37   :  { %540 = vmatprep.subr.bf16.mxu0 %v565_v14 }
  0x3a   :  { %541 = vmatpush3.bf16.msra.mxu0 %v565_v14 }
  0x3d   :  { %543 = vmatmul.mubr.msk.bf16.vlgmr.msra.gmra.mxu0 %vm99_vm0, %v560_v11 }
  0xed   :  { %v520_v16 = vpop.f32.mrf.mxu0 }
  0xee   :  { %v161_v18 = vadd.f32 %v520_v16, %v157_v15 }
  0xef   :  { %v140_v19 = vpop.f32.mrf.mxu0  ;;  %v532_v23 = vpop.f32.mrf.mxu1 }
  0xf0   :  { %165 = vst [vmem:[#allocation2 + $0x1a] sm:$0xff] %v161_v18  ;;  %v159_v21 = vadd.f32 %v155_v17, %v140_v19 }
  0xf1   :  { %v521_v22 = vpop.f32.mrf.mxu0  ;;  %v234_v28 = vpop.f32.mrf.mxu1 }
  0xf2   :  { %163 = vst [vmem:[#allocation2 + $0x2] sm:$0xff] %v159_v21  ;;  %v162_v25 = vadd.f32 %v521_v22, %v158_v20 }
  0xf3   :  { %v143_v26 = vpop.f32.mrf.mxu0  ;;  %v533_v32 = vpop.f32.mrf.mxu1 }
  0xf4   :  { %166 = vst [vmem:[#allocation2 + $0x22] sm:$0xff] %v162_v25  ;;  %v160_v27 = vadd.f32 %v156_v24, %v143_v26 }
  0xf5   :  { %v237_v36 = vpop.f32.mrf.mxu1 }
  0xf6   :  { %164 = vst [vmem:[#allocation2 + $0xa] sm:$0xff] %v160_v27 }
  0xf7   :  { %v251_v29 = vld [vmem:[#allocation2 + $0x19] sm:$0xff] }
  0xf8   :  { %v255_v30 = vadd.f32 %v532_v23, %v251_v29 }
  0xf9   :  { %v249_v31 = vld [vmem:[#allocation2 + $0x1] sm:$0xff] }
  0xfa   :  { %259 = vst [vmem:[#allocation2 + $0x19] sm:$0xff] %v255_v30  ;;  %v253_v33 = vadd.f32 %v249_v31, %v234_v28 }
  0xfb   :  { %v252_v34 = vld [vmem:[#allocation2 + $0x21] sm:$0xff] }
  0xfc   :  { %257 = vst [vmem:[#allocation2 + $0x1] sm:$0xff] %v253_v33  ;;  %v256_v35 = vadd.f32 %v533_v32, %v252_v34 }
  0xfd   :  { %v250_v37 = vld [vmem:[#allocation2 + $0x9] sm:$0xff]  ;;  %v544_v38 = vpop.f32.mrf.mxu0 }
  0xfe   :  { %260 = vst [vmem:[#allocation2 + $0x21] sm:$0xff] %v256_v35  ;;  %v254_v39 = vadd.f32 %v250_v37, %v237_v36 }
  0xff   :  { %v328_v40 = vpop.f32.mrf.mxu0 }
 0x100   :  { %258 = vst [vmem:[#allocation2 + $0x9] sm:$0xff] %v254_v39 }
 0x101   :  { %v345_v41 = vld [vmem:[#allocation2 + $0x18] sm:$0xff]  ;;  %v545_v44 = vpop.f32.mrf.mxu0 }
 0x102   :  { %v349_v42 = vadd.f32 %v544_v38, %v345_v41 }
 0x103   :  { %v343_v43 = vld [vmem:[#allocation2] sm:$0xff]  ;;  %v331_v48 = vpop.f32.mrf.mxu0 }
 0x104   :  { %353 = vst [vmem:[#allocation2 + $0x18] sm:$0xff] %v349_v42  ;;  %v347_v45 = vadd.f32 %v343_v43, %v328_v40 }
 0x105   :  { %v346_v46 = vld [vmem:[#allocation2 + $0x20] sm:$0xff] }
 0x106   :  { %351 = vst [vmem:[#allocation2] sm:$0xff] %v347_v45  ;;  %v350_v47 = vadd.f32 %v545_v44, %v346_v46 }
 0x107   :  { %v344_v49 = vld [vmem:[#allocation2 + $0x8] sm:$0xff] }
 0x108   :  { %354 = vst [vmem:[#allocation2 + $0x20] sm:$0xff] %v350_v47  ;;  %v348_v50 = vadd.f32 %v344_v49, %v331_v48 }
 0x10a   :  { %352 = vst [vmem:[#allocation2 + $0x8] sm:$0xff] %v348_v50 }
 0x10f   :  { %v357_v52 = vld [vmem:[#allocation2 + $0x19] sm:$0xff]  ;;  %v358_v53 = vld [vmem:[#allocation2 + $0x21] sm:$0xff] }
 0x110   :  { %v368_v55 = vmul.f32 %v467_v51, %v357_v52  ;;  %v369_v56 = vmul.f32 %v467_v51, %v358_v53 }
 0x111   :  { %v355_v57 = vld [vmem:[#allocation2 + $0x1] sm:$0xff]  ;;  %v356_v58 = vld [vmem:[#allocation2 + $0x9] sm:$0xff] }
 0x112   :  { %v366_v59 = vmul.f32 %v467_v51, %v355_v57  ;;  %v367_v60 = vmul.f32 %v467_v51, %v356_v58  ;;  %v379_v61 = vadd.f32 %v468_v54, %v368_v55  ;;  %v380_v62 = vadd.f32 %v468_v54, %v369_v56 }
 0x114   :  { %v377_v63 = vadd.f32 %v468_v54, %v366_v59  ;;  %v378_v0 = vadd.f32 %v468_v54, %v367_v60  ;;  %v471_v1 = vmul.f32 -1.442695, %v379_v61  ;;  %v472_v2 = vmul.f32 -1.442695, %v380_v62 }
 0x116   :  { %v469_v3 = vmul.f32 -1.442695, %v377_v63  ;;  %v470_v4 = vmul.f32 -1.442695, %v378_v0  ;;  %566 = vpow2.f32 %v471_v1 }
 0x117   :  { %568 = vpow2.f32 %v472_v2 }
 0x118   :  { %570 = vpow2.f32 %v469_v3 }
 0x119   :  { %572 = vpow2.f32 %v470_v4 }
 0x123   :  { %v567_v5 = vpop.eup %566 }
 0x124   :  { %v569_v6 = vpop.eup %568  ;;  %v395_v7 = vadd.f32 1.0, %v567_v5 }
 0x125   :  { %v571_v8 = vpop.eup %570  ;;  %v396_v9 = vadd.f32 1.0, %v569_v6 }
 0x126   :  { %v573_v10 = vpop.eup %572  ;;  %v393_v11 = vadd.f32 1.0, %v571_v8  ;;  %574 = vrcp.f32 %v395_v7 }
 0x127   :  { %v394_v12 = vadd.f32 1.0, %v573_v10  ;;  %576 = vrcp.f32 %v396_v9 }
 0x128   :  { %578 = vrcp.f32 %v393_v11 }
 0x129   :  { %580 = vrcp.f32 %v394_v12 }
 0x133   :  { %v575_v13 = vpop.eup %574 }
 0x134   :  { %v577_v14 = vpop.eup %576  ;;  %v407_v15 = vmul.f32 %v575_v13, %v379_v61 }
 0x135   :  { %v579_v16 = vpop.eup %578  ;;  %v408_v17 = vmul.f32 %v577_v14, %v380_v62 }
 0x136   :  { %v581_v18 = vpop.eup %580  ;;  %v405_v19 = vmul.f32 %v579_v16, %v377_v63 }
 0x137   :  { %v406_v20 = vmul.f32 %v581_v18, %v378_v0  ;;  %v489_v21 = vpack.c.bf16 %v408_v17, %v407_v15 }
 0x139   :  { %v484_v22 = vpack.c.bf16 %v406_v20, %v405_v19  ;;  %491 = vst [vmem:[#allocation8 + $0x8] sm:$0xff] %v489_v21  }
 0x13b   :  { %485 = vst [vmem:[#allocation8] sm:$0xff] %v484_v22  }
 0x13c   :  { %633 = shalt.err (!%p630_p0)
}
 0x13d   :  { %440 = dma.vmem_to_hbm [thread:$0]  %s435_s3, 256, %s713_s4, [#allocation5], %s649_s18, %s649_s18, %s650_s19  }
 0x13e   :  { %646 = dma.done.wait [#allocation5], 256  }
 0x13f   :  { %647 = vsyncadd [#allocation5], 4294967040 }
 0x140   :  { %444 = vsyncpa [#allocation4], 1 }
 0x141   :  { %445 = vsyncpa [#allocation7], 1 }
 0x142   :  { %446 = vsyncpa [#allocation5], 1 }

</bundles_post_ra>
